<compile_context>
chip_gen: v6e
topology: v6e:2x2x1
jax: 0.10.0
libtpu: 0.0.40
codegen_flags: <defaults>
</compile_context>

<pallas_src>
import jax
import jax.numpy as jnp
from jax.experimental import pallas as pl
from jax.experimental.pallas import tpu as pltpu

LANE = 128


def _round_up(n, m):
    return ((n + m - 1) // m) * m


def vanilla_rnn_kernel(x3_ref, whx_ref, bh_ref, whh_t_ref, wph_t_ref, bp_ref, p_ref):
    """Whole-sequence vanilla RNN forward; writes last-step logits to p_ref.

    x3_ref:    (T, B, 1)   time-major input (input_dim == 1)
    whx_ref:   (1, 1, Hp)  zero-padded W_hx.T
    bh_ref:    (1, 1, Hp)  zero-padded b_h
    whh_t_ref: (Hp, Hp)    zero-padded W_hh.T
    wph_t_ref: (Hp, Cp)    zero-padded W_ph.T
    bp_ref:    (1, Cp)     zero-padded b_p
    p_ref:     (B, Cp)     lane-dense output; real logits in the first C cols
    """
    T = x3_ref.shape[0]

    # ---- prologue (runs once): hoist input contribution + bias off the
    # serial chain.  inp_all[t] == x[:, t:t+1] @ W_hx.T + b_h  (exact, K == 1).
    inp_all = x3_ref[...] * whx_ref[...] + bh_ref[...]        # (T, B, Hp)

    whh_t = whh_t_ref[...]                                    # (Hp, Hp), kept hot

    # ---- fully unrolled recurrence; per-step body is one (B,Hp)x(Hp,Hp)
    # matmul + tanh.  h0 == 0, so step 0's recurrence term is exactly zero.
    h = jnp.tanh(inp_all[0])                                  # (B, Hp)
    for t in range(1, T):
        rec = jnp.dot(h, whh_t, preferred_element_type=jnp.float32)
        h = jnp.tanh(inp_all[t] + rec)

    # ---- last-step logits only (equivalent to the PyTorch loop that
    # overwrites p each iteration).  Keep this OUT of the loop.
    p = jnp.dot(h, wph_t_ref[...], preferred_element_type=jnp.float32) + bp_ref[...]
    p_ref[...] = p.astype(p_ref.dtype)


def vanilla_rnn_forward(x, W_hx, W_hh, b_h, W_ph, b_p):
    """x: (batch, seq_length) float32. Returns (batch, num_classes) float32."""
    B, T = x.shape
    H = W_hh.shape[0]
    C = W_ph.shape[0]
    Hp = _round_up(H, LANE)
    Cp = _round_up(C, LANE)

    f32 = jnp.float32
    # Time-major input with a trailing singleton dim -> no in-kernel relayout.
    x3 = x.astype(f32).T[:, :, None]                                     # (T, B, 1)
    # Zero-padded, pre-transposed weights (padded lanes stay exactly 0).
    whx = jnp.zeros((1, 1, Hp), f32).at[0, 0, :H].set(W_hx.astype(f32)[:, 0])
    bh = jnp.zeros((1, 1, Hp), f32).at[0, 0, :H].set(b_h.astype(f32))
    whh_t = jnp.zeros((Hp, Hp), f32).at[:H, :H].set(W_hh.astype(f32).T)
    wph_t = jnp.zeros((Hp, Cp), f32).at[:H, :C].set(W_ph.astype(f32).T)
    bp = jnp.zeros((1, Cp), f32).at[0, :C].set(b_p.astype(f32))

    p_pad = pl.pallas_call(
        vanilla_rnn_kernel,
        out_shape=jax.ShapeDtypeStruct((B, Cp), f32),
        in_specs=[
            pl.BlockSpec(memory_space=pltpu.MemorySpace.VMEM),  # x (T, B, 1)
            pl.BlockSpec(memory_space=pltpu.MemorySpace.VMEM),  # W_hx.T
            pl.BlockSpec(memory_space=pltpu.MemorySpace.VMEM),  # b_h
            pl.BlockSpec(memory_space=pltpu.MemorySpace.VMEM),  # W_hh.T
            pl.BlockSpec(memory_space=pltpu.MemorySpace.VMEM),  # W_ph.T
            pl.BlockSpec(memory_space=pltpu.MemorySpace.VMEM),  # b_p
        ],
        out_specs=pl.BlockSpec(memory_space=pltpu.MemorySpace.VMEM),
    )(x3, whx, bh, whh_t, wph_t, bp)

    return p_pad[:, :C]


def vanilla_rnn_reference(x, W_hx, W_hh, b_h, W_ph, b_p):
    """Pure-JAX reference mirroring the PyTorch forward."""
    B = x.shape[0]
    H = W_hh.shape[0]
    h = jnp.zeros((B, H), jnp.float32)
    p = None
    for t in range(x.shape[1]):
        h = jnp.tanh(x[:, t].reshape(-1, 1) @ W_hx.T + h @ W_hh.T + b_h)
        p = h @ W_ph.T + b_p
    return p


def xavier_normal(key, shape):
    fan_out, fan_in = shape
    std = (2.0 / (fan_in + fan_out)) ** 0.5
    return std * jax.random.normal(key, shape, dtype=jnp.float32)


if __name__ == "__main__":
    # Module hyperparameters implied by the forward pass (input_dim must be 1).
    batch_size, seq_length, input_dim, num_hidden, num_classes = 8, 8, 1, 32, 10

    root = jax.random.PRNGKey(0)
    k_whx, k_whh, k_wph, k_x = jax.random.split(root, 4)

    # Deterministic parameter init (xavier_normal for weights, zeros for biases),
    # matching the nn.Parameter shapes in __init__.
    W_hx = xavier_normal(k_whx, (num_hidden, input_dim))       # (H, 1)
    W_hh = xavier_normal(k_whh, (num_hidden, num_hidden))      # (H, H)
    b_h = jnp.zeros((num_hidden,), jnp.float32)
    W_ph = xavier_normal(k_wph, (num_classes, num_hidden))     # (C, H)
    b_p = jnp.zeros((num_classes,), jnp.float32)

    x = jax.random.normal(k_x, (batch_size, seq_length), dtype=jnp.float32)

    out = vanilla_rnn_forward(x, W_hx, W_hh, b_h, W_ph, b_p)
    out = jax.block_until_ready(out)

    ref = vanilla_rnn_reference(x, W_hx, W_hh, b_h, W_ph, b_p)
    assert out.shape == (batch_size, num_classes)
    assert jnp.allclose(out, ref, atol=1e-5, rtol=1e-5), "Pallas output mismatch vs reference"

    print("KERNEL_OK")
</pallas_src>

<mosaic_0001>
module attributes {stable_mosaic.version = 11 : i64} {
  func.func @vanilla_rnn_kernel(%arg0: memref<8x8x1xf32, #tpu.memory_space<vmem>>, %arg1: memref<1x1x128xf32, #tpu.memory_space<vmem>>, %arg2: memref<1x1x128xf32, #tpu.memory_space<vmem>>, %arg3: memref<128x128xf32, #tpu.memory_space<vmem>>, %arg4: memref<128x128xf32, #tpu.memory_space<vmem>>, %arg5: memref<1x128xf32, #tpu.memory_space<vmem>>, %arg6: memref<8x128xf32, #tpu.memory_space<vmem>>) attributes {dimension_semantics = [], scalar_prefetch = 0 : i64, scratch_operands = 0 : i64, tpu.core_type = #tpu.core_type<tc>} {
    %c0 = arith.constant 0 : index
    %c0_0 = arith.constant 0 : index
    %c0_1 = arith.constant 0 : index
    %0 = vector.load %arg0[%c0, %c0_0, %c0_1] : memref<8x8x1xf32, #tpu.memory_space<vmem>>, vector<8x8x1xf32>
    %c0_2 = arith.constant 0 : index
    %c0_3 = arith.constant 0 : index
    %c0_4 = arith.constant 0 : index
    %1 = vector.load %arg1[%c0_2, %c0_3, %c0_4] : memref<1x1x128xf32, #tpu.memory_space<vmem>>, vector<1x1x128xf32>
    %2 = vector.broadcast %0 : vector<8x8x1xf32> to vector<8x8x128xf32>
    %3 = vector.broadcast %1 : vector<1x1x128xf32> to vector<8x8x128xf32>
    %4 = arith.mulf %2, %3 : vector<8x8x128xf32>
    %c0_5 = arith.constant 0 : index
    %c0_6 = arith.constant 0 : index
    %c0_7 = arith.constant 0 : index
    %5 = vector.load %arg2[%c0_5, %c0_6, %c0_7] : memref<1x1x128xf32, #tpu.memory_space<vmem>>, vector<1x1x128xf32>
    %6 = vector.broadcast %5 : vector<1x1x128xf32> to vector<8x8x128xf32>
    %7 = arith.addf %4, %6 : vector<8x8x128xf32>
    %c0_8 = arith.constant 0 : index
    %c0_9 = arith.constant 0 : index
    %8 = vector.load %arg3[%c0_8, %c0_9] : memref<128x128xf32, #tpu.memory_space<vmem>>, vector<128x128xf32>
    %9 = vector.extract_strided_slice %7 {offsets = [0, 0, 0], sizes = [1, 8, 128], strides = [1, 1, 1]} : vector<8x8x128xf32> to vector<1x8x128xf32>
    %10 = vector.shape_cast %9 : vector<1x8x128xf32> to vector<8x128xf32>
    %11 = math.tanh %10 : vector<8x128xf32>
    %cst = arith.constant dense<0.000000e+00> : vector<8x128xf32>
    %12 = tpu.matmul %11, %8, %cst {dimension_numbers = #tpu.dot_dimension_numbers<[1], [0], [0], [1], [0, 0, 1, 1], [], []>} : vector<8x128xf32>, vector<128x128xf32>, vector<8x128xf32> -> vector<8x128xf32>
    %13 = vector.extract_strided_slice %7 {offsets = [1, 0, 0], sizes = [1, 8, 128], strides = [1, 1, 1]} : vector<8x8x128xf32> to vector<1x8x128xf32>
    %14 = vector.shape_cast %13 : vector<1x8x128xf32> to vector<8x128xf32>
    %15 = arith.addf %14, %12 : vector<8x128xf32>
    %16 = math.tanh %15 : vector<8x128xf32>
    %cst_10 = arith.constant dense<0.000000e+00> : vector<8x128xf32>
    %17 = tpu.matmul %16, %8, %cst_10 {dimension_numbers = #tpu.dot_dimension_numbers<[1], [0], [0], [1], [0, 0, 1, 1], [], []>} : vector<8x128xf32>, vector<128x128xf32>, vector<8x128xf32> -> vector<8x128xf32>
    %18 = vector.extract_strided_slice %7 {offsets = [2, 0, 0], sizes = [1, 8, 128], strides = [1, 1, 1]} : vector<8x8x128xf32> to vector<1x8x128xf32>
    %19 = vector.shape_cast %18 : vector<1x8x128xf32> to vector<8x128xf32>
    %20 = arith.addf %19, %17 : vector<8x128xf32>
    %21 = math.tanh %20 : vector<8x128xf32>
    %cst_11 = arith.constant dense<0.000000e+00> : vector<8x128xf32>
    %22 = tpu.matmul %21, %8, %cst_11 {dimension_numbers = #tpu.dot_dimension_numbers<[1], [0], [0], [1], [0, 0, 1, 1], [], []>} : vector<8x128xf32>, vector<128x128xf32>, vector<8x128xf32> -> vector<8x128xf32>
    %23 = vector.extract_strided_slice %7 {offsets = [3, 0, 0], sizes = [1, 8, 128], strides = [1, 1, 1]} : vector<8x8x128xf32> to vector<1x8x128xf32>
    %24 = vector.shape_cast %23 : vector<1x8x128xf32> to vector<8x128xf32>
    %25 = arith.addf %24, %22 : vector<8x128xf32>
    %26 = math.tanh %25 : vector<8x128xf32>
    %cst_12 = arith.constant dense<0.000000e+00> : vector<8x128xf32>
    %27 = tpu.matmul %26, %8, %cst_12 {dimension_numbers = #tpu.dot_dimension_numbers<[1], [0], [0], [1], [0, 0, 1, 1], [], []>} : vector<8x128xf32>, vector<128x128xf32>, vector<8x128xf32> -> vector<8x128xf32>
    %28 = vector.extract_strided_slice %7 {offsets = [4, 0, 0], sizes = [1, 8, 128], strides = [1, 1, 1]} : vector<8x8x128xf32> to vector<1x8x128xf32>
    %29 = vector.shape_cast %28 : vector<1x8x128xf32> to vector<8x128xf32>
    %30 = arith.addf %29, %27 : vector<8x128xf32>
    %31 = math.tanh %30 : vector<8x128xf32>
    %cst_13 = arith.constant dense<0.000000e+00> : vector<8x128xf32>
    %32 = tpu.matmul %31, %8, %cst_13 {dimension_numbers = #tpu.dot_dimension_numbers<[1], [0], [0], [1], [0, 0, 1, 1], [], []>} : vector<8x128xf32>, vector<128x128xf32>, vector<8x128xf32> -> vector<8x128xf32>
    %33 = vector.extract_strided_slice %7 {offsets = [5, 0, 0], sizes = [1, 8, 128], strides = [1, 1, 1]} : vector<8x8x128xf32> to vector<1x8x128xf32>
    %34 = vector.shape_cast %33 : vector<1x8x128xf32> to vector<8x128xf32>
    %35 = arith.addf %34, %32 : vector<8x128xf32>
    %36 = math.tanh %35 : vector<8x128xf32>
    %cst_14 = arith.constant dense<0.000000e+00> : vector<8x128xf32>
    %37 = tpu.matmul %36, %8, %cst_14 {dimension_numbers = #tpu.dot_dimension_numbers<[1], [0], [0], [1], [0, 0, 1, 1], [], []>} : vector<8x128xf32>, vector<128x128xf32>, vector<8x128xf32> -> vector<8x128xf32>
    %38 = vector.extract_strided_slice %7 {offsets = [6, 0, 0], sizes = [1, 8, 128], strides = [1, 1, 1]} : vector<8x8x128xf32> to vector<1x8x128xf32>
    %39 = vector.shape_cast %38 : vector<1x8x128xf32> to vector<8x128xf32>
    %40 = arith.addf %39, %37 : vector<8x128xf32>
    %41 = math.tanh %40 : vector<8x128xf32>
    %cst_15 = arith.constant dense<0.000000e+00> : vector<8x128xf32>
    %42 = tpu.matmul %41, %8, %cst_15 {dimension_numbers = #tpu.dot_dimension_numbers<[1], [0], [0], [1], [0, 0, 1, 1], [], []>} : vector<8x128xf32>, vector<128x128xf32>, vector<8x128xf32> -> vector<8x128xf32>
    %43 = vector.extract_strided_slice %7 {offsets = [7, 0, 0], sizes = [1, 8, 128], strides = [1, 1, 1]} : vector<8x8x128xf32> to vector<1x8x128xf32>
    %44 = vector.shape_cast %43 : vector<1x8x128xf32> to vector<8x128xf32>
    %45 = arith.addf %44, %42 : vector<8x128xf32>
    %46 = math.tanh %45 : vector<8x128xf32>
    %c0_16 = arith.constant 0 : index
    %c0_17 = arith.constant 0 : index
    %47 = vector.load %arg4[%c0_16, %c0_17] : memref<128x128xf32, #tpu.memory_space<vmem>>, vector<128x128xf32>
    %cst_18 = arith.constant dense<0.000000e+00> : vector<8x128xf32>
    %48 = tpu.matmul %46, %47, %cst_18 {dimension_numbers = #tpu.dot_dimension_numbers<[1], [0], [0], [1], [0, 0, 1, 1], [], []>} : vector<8x128xf32>, vector<128x128xf32>, vector<8x128xf32> -> vector<8x128xf32>
    %c0_19 = arith.constant 0 : index
    %c0_20 = arith.constant 0 : index
    %49 = vector.load %arg5[%c0_19, %c0_20] : memref<1x128xf32, #tpu.memory_space<vmem>>, vector<1x128xf32>
    %50 = vector.broadcast %49 : vector<1x128xf32> to vector<8x128xf32>
    %51 = arith.addf %48, %50 : vector<8x128xf32>
    %c0_21 = arith.constant 0 : index
    %c0_22 = arith.constant 0 : index
    %52 = vector.load %arg6[%c0_21, %c0_22] : memref<8x128xf32, #tpu.memory_space<vmem>>, vector<8x128xf32>
    tpu.vector_store %arg6[%c0_21, %c0_22], %51 {strides = array<i32>} : memref<8x128xf32, #tpu.memory_space<vmem>>, vector<8x128xf32>,
    return
  }
}

</mosaic_0001>

<bundles_post_ra>
// kernel: tpu_custom_call.1
= control target key start
LH: loop header
LB: loop body
LE: loop exit
PB: predicated region body
PF: predicated region fallthrough
CT: control target
= control target key end

     0   :  { %11 = vsyncpa [#allocation3], 0  ;;  %s1665_s0 = inlined_call_operand.vmem [shape: f32[8,8,1], index: 0, kind: input, shape index: {}]   ;;  %s1666_s1 = inlined_call_operand.vmem [shape: f32[1,1,128], index: 1, kind: input, shape index: {}]   ;;  %s1667_s2 = inlined_call_operand.vmem [shape: f32[1,1,128], index: 2, kind: input, shape index: {}]   ;;  %s1668_s3 = inlined_call_operand.hbm [shape: f32[128,128], index: 3, kind: input, shape index: {}]   ;;  %s1669_s4 = inlined_call_operand.hbm [shape: f32[128,128], index: 4, kind: input, shape index: {}]   ;;  %s1670_s5 = inlined_call_operand.vmem [shape: f32[1,128], index: 5, kind: input, shape index: {}]   ;;  %s1671_s6 = inlined_call_operand.hbm [shape: f32[8,128], index: 6, kind: output, shape index: {}]  }
   0x1   :  { %12 = vsyncpa [#allocation6], 0 }
   0x2   :  { %13 = vsyncpa [#allocation4], 0  ;;  %s1272_s21 = smov [#allocation2]  }
   0x3   :  { %s25_s22 = sshll.u32 %s1272_s21, 4  ;;  %s26_s22 = int_to_ptr.vmem [resolvable:$true] %s25_s22 }
   0x4   :  { %s1214_s23 = scalar_lea.vmem %s26_s22, 2048  ;;  %p1219_p1 = scmp.lt.s32.totalorder %s26_s22, %s26_s22 }
   0x5   :  { %p1215_p0 = scmp.ne.s32.totalorder %s26_s22, %s1214_s23  ;;  %p1220_p2 = scmp.lt.s32.totalorder %s1214_s23, %s1214_s23 }
   0x7   :  { %p1221_p3 = por %p1220_p2, %p1219_p1 }
   0x9   :  { %p1222_p4 = pnand %p1221_p3, %p1215_p0 }
   0xb   :  { %1225 = shalt.err (!%p1222_p4)
}
   0xc   :  { %s1273_s24 = smov 128   ;;  %s1274_s25 = smov 8  }
   0xd   :  { %31 = dma.hbm_to_vmem [thread:$0]  %s1668_s3, 2048, %s26_s22, [#allocation3], %s1273_s24, %s1273_s24, %s1274_s25  }
   0xe   :  { %s1275_s28 = smov [#allocation5]  }
   0xf   :  { %s37_s29 = sshll.u32 %s1275_s28, 4  ;;  %s38_s29 = int_to_ptr.vmem [resolvable:$true] %s37_s29 }
  0x10   :  { %s1234_s30 = scalar_lea.vmem %s38_s29, 2048  ;;  %p1239_p6 = scmp.lt.s32.totalorder %s38_s29, %s38_s29 }
  0x11   :  { %p1235_p5 = scmp.ne.s32.totalorder %s38_s29, %s1234_s30  ;;  %p1240_p7 = scmp.lt.s32.totalorder %s1234_s30, %s1234_s30 }
  0x13   :  { %p1241_p8 = por %p1240_p7, %p1239_p6 }
  0x15   :  { %p1242_p9 = pnand %p1241_p8, %p1235_p5 }
  0x17   :  { %1245 = shalt.err (!%p1242_p9)
}
  0x18   :  { %43 = dma.hbm_to_vmem [thread:$0]  %s1669_s4, 2048, %s38_s29, [#allocation6], %s1273_s24, %s1273_s24, %s1274_s25  }
  0x19   :  { %1266 = dma.done.wait [#allocation3], 2048  }
  0x1a   :  { %1267 = vsyncadd [#allocation3], 4294965248 }
  0x1b   :  { %1268 = dma.done.wait [#allocation6], 2048  }
  0x1c   :  { %1269 = vsyncadd [#allocation6], 4294965248  ;;  %v1276_v0 = vmov 0   ;;  %v1277_v1 = vmov 0.0   ;;  %v52_v2 = vld [vmem:[%s1665_s0] sm:$0xff]  ;;  %v1326_v3 = vld [vmem:[#allocation2 + $0x78] sm:$0xff] }
  0x1d   :  { %1188 = vset.pattern.permute.xlu0 %v1276_v0  ;;  %900 = vmatprep.subr.mxu0 %v1277_v1  ;;  %v1328_v4 = vld [vmem:[#allocation2 + $0x70] sm:$0xff]  ;;  %v53_v5 = vld [vmem:[%s1665_s0 + $0x8] sm:$0xff]  ;;  %v1342_v7 = vld [vmem:[#allocation2 + $0x60] sm:$0xff]  ;;  %vm1278_vm0 = vmmov 0   ;;  %s1279_s26 = smov [#allocation7]  }
  0x1e   :  { %935 = vmatprep.subr.mxu1 %v1277_v1  ;;  %1189 = vset.pattern.permute.xlu1 %v1276_v0  ;;  %v1336_v6 = vld [vmem:[#allocation2 + $0x68] sm:$0xff]  ;;  %v56_v8 = vld [vmem:[%s1665_s0 + $0x20] sm:$0xff]  ;;  %v1350_v9 = vld [vmem:[#allocation2 + $0x58] sm:$0xff]  ;;  %s751_s27 = sshll.u32 %s1279_s26, 4  ;;  %s752_s27 = int_to_ptr.vmem [resolvable:$true] %s751_s27 }
  0x1f   :  { %63 = vperm.xlu0 %1188, %v52_v2   ;;  %901 = vmatpush3.msra.mxu0 %v1326_v3  ;;  %v1356_v10 = vld [vmem:[#allocation2 + $0x50] sm:$0xff]  ;;  %v1365_v12 = vld [vmem:[#allocation2 + $0x48] sm:$0xff]  ;;  %v1371_v13 = vld [vmem:[#allocation2 + $0x40] sm:$0xff]  ;;  %s1246_s28 = scalar_lea.vmem %s752_s27, 128  ;;  %p1251_p11 = scmp.lt.s32.totalorder %s752_s27, %s752_s27 }
  0x20   :  { %936 = vmatpush3.msra.mxu1 %v1326_v3  ;;  %902 = vmatprep.subr.mxu0 %v1277_v1  ;;  %v58_v11 = vld [vmem:[%s1665_s0 + $0x30] sm:$0xff]  ;;  %v1376_v14 = vld [vmem:[#allocation2 + $0x38] sm:$0xff]  ;;  %v1388_v16 = vld [vmem:[#allocation2 + $0x28] sm:$0xff]  ;;  %p1247_p10 = scmp.ne.s32.totalorder %s752_s27, %s1246_s28  ;;  %p1252_p12 = scmp.lt.s32.totalorder %s1246_s28, %s1246_s28 }
  0x21   :  { %937 = vmatprep.subr.mxu1 %v1277_v1  ;;  %903 = vmatpush3.msra.mxu0 %v1328_v4  ;;  %v1382_v15 = vld [vmem:[#allocation2 + $0x30] sm:$0xff]  ;;  %v1394_v17 = vld [vmem:[#allocation2 + $0x20] sm:$0xff]  ;;  %v1400_v18 = vld [vmem:[#allocation2 + $0x18] sm:$0xff] }
  0x22   :  { %938 = vmatpush3.msra.mxu1 %v1328_v4  ;;  %904 = vmatprep.subr.mxu0 %v1277_v1  ;;  %v1406_v19 = vld [vmem:[#allocation2 + $0x10] sm:$0xff]  ;;  %v1412_v20 = vld [vmem:[#allocation2 + $0x8] sm:$0xff]  ;;  %v1418_v21 = vld [vmem:[#allocation2] sm:$0xff]  ;;  %p1253_p13 = por %p1252_p12, %p1251_p11 }
  0x23   :  { %68 = vperm.xlu0 %1188, %v53_v5   ;;  %905 = vmatpush3.msra.mxu0 %v1336_v6  ;;  %v1438_v22 = vld [vmem:[%s1666_s1] ss:$0 sm:$0xff]  ;;  %v54_v28 = vld [vmem:[%s1665_s0 + $0x10] sm:$0xff]  ;;  %v55_v29 = vld [vmem:[%s1665_s0 + $0x18] sm:$0xff] }
  0x24   :  { %939 = vmatprep.subr.mxu1 %v1277_v1  ;;  %906 = vmatprep.subr.mxu0 %v1277_v1  ;;  %v1443_v23 = vld [vmem:[%s1667_s2] ss:$0 sm:$0xff]  ;;  %v57_v30 = vld [vmem:[%s1665_s0 + $0x28] sm:$0xff]  ;;  %v59_v31 = vld [vmem:[%s1665_s0 + $0x38] sm:$0xff]  ;;  %p1254_p0 = pnand %p1253_p13, %p1247_p10 }
  0x25   :  { %940 = vmatpush3.msra.mxu1 %v1336_v6  ;;  %907 = vmatpush3.msra.mxu0 %v1342_v7  ;;  %v665_v5 = vld [vmem:[#allocation5 + $0x70] sm:$0xff] }
  0x26   :  { %941 = vmatprep.subr.mxu1 %v1277_v1  ;;  %908 = vmatprep.subr.mxu0 %v1277_v1 }
  0x27   :  { %83 = vperm.xlu0 %1188, %v56_v8   ;;  %909 = vmatpush3.msra.mxu0 %v1350_v9  ;;  %v662_v8 = vld [vmem:[#allocation5 + $0x58] sm:$0xff] }
  0x28   :  { %932 = vmatprep.mubr.msk.f32.mxu0 %vm1278_vm0, %v1277_v1  ;;  %910 = vmatprep.subr.mxu0 %v1277_v1 }
  0x29   :  { %942 = vmatpush3.msra.mxu1 %v1342_v7  ;;  %911 = vmatpush3.msra.mxu0 %v1356_v10 }
  0x2a   :  { %943 = vmatprep.subr.mxu1 %v1277_v1  ;;  %912 = vmatprep.subr.mxu0 %v1277_v1 }
  0x2b   :  { %93 = vperm.xlu0 %1188, %v58_v11   ;;  %913 = vmatpush3.msra.mxu0 %v1365_v12 }
  0x2c   :  { %944 = vmatpush3.msra.mxu1 %v1350_v9  ;;  %914 = vmatprep.subr.mxu0 %v1277_v1 }
  0x2d   :  { %945 = vmatprep.subr.mxu1 %v1277_v1  ;;  %915 = vmatpush3.msra.mxu0 %v1371_v13 }
  0x2e   :  { %946 = vmatpush3.msra.mxu1 %v1356_v10  ;;  %916 = vmatprep.subr.mxu0 %v1277_v1 }
  0x2f   :  { %947 = vmatprep.subr.mxu1 %v1277_v1  ;;  %917 = vmatpush3.msra.mxu0 %v1376_v14 }
  0x30   :  { %948 = vmatpush3.msra.mxu1 %v1365_v12  ;;  %918 = vmatprep.subr.mxu0 %v1277_v1 }
  0x31   :  { %949 = vmatprep.subr.mxu1 %v1277_v1  ;;  %919 = vmatpush3.msra.mxu0 %v1382_v15 }
  0x32   :  { %950 = vmatpush3.msra.mxu1 %v1371_v13  ;;  %920 = vmatprep.subr.mxu0 %v1277_v1 }
  0x33   :  { %951 = vmatprep.subr.mxu1 %v1277_v1  ;;  %921 = vmatpush3.msra.mxu0 %v1388_v16 }
  0x34   :  { %952 = vmatpush3.msra.mxu1 %v1376_v14  ;;  %922 = vmatprep.subr.mxu0 %v1277_v1 }
  0x35   :  { %953 = vmatprep.subr.mxu1 %v1277_v1  ;;  %923 = vmatpush3.msra.mxu0 %v1394_v17 }
  0x36   :  { %954 = vmatpush3.msra.mxu1 %v1382_v15  ;;  %924 = vmatprep.subr.mxu0 %v1277_v1 }
  0x37   :  { %955 = vmatprep.subr.mxu1 %v1277_v1  ;;  %925 = vmatpush3.msra.mxu0 %v1400_v18 }
  0x38   :  { %956 = vmatpush3.msra.mxu1 %v1388_v16  ;;  %926 = vmatprep.subr.mxu0 %v1277_v1 }
  0x39   :  { %957 = vmatprep.subr.mxu1 %v1277_v1  ;;  %927 = vmatpush3.msra.mxu0 %v1406_v19 }
  0x3a   :  { %958 = vmatpush3.msra.mxu1 %v1394_v17  ;;  %928 = vmatprep.subr.mxu0 %v1277_v1 }
  0x3b   :  { %959 = vmatprep.subr.mxu1 %v1277_v1  ;;  %929 = vmatpush3.msra.mxu0 %v1412_v20 }
  0x3c   :  { %960 = vmatpush3.msra.mxu1 %v1400_v18  ;;  %930 = vmatprep.subr.mxu0 %v1277_v1 }
  0x3d   :  { %961 = vmatprep.subr.mxu1 %v1277_v1  ;;  %931 = vmatpush3.msra.mxu0 %v1418_v21 }
  0x3e   :  { %962 = vmatpush3.msra.mxu1 %v1406_v19  ;;  %967 = vmatprep.mubr.msk.f32.mxu1 %vm1278_vm0, %v1277_v1 }
  0x3f   :  { %963 = vmatprep.subr.mxu1 %v1277_v1  ;;  %970 = vmatprep.subr.mxu0 %v1277_v1 }
  0x40   :  { %964 = vmatpush3.msra.mxu1 %v1412_v20  ;;  %73 = vperm.xlu1 %1189, %v54_v28   ;;  %v651_v28 = vld [vmem:[#allocation5] sm:$0xff] }
  0x41   :  { %965 = vmatprep.subr.mxu1 %v1277_v1 }
  0x42   :  { %966 = vmatpush3.msra.mxu1 %v1418_v21 }
  0x43   :  { %1005 = vmatprep.subr.mxu1 %v1277_v1 }
  0x44   :  { %78 = vperm.xlu1 %1189, %v55_v29  }
  0x48   :  { %88 = vperm.xlu1 %1189, %v57_v30  }
  0x4c   :  { %98 = vperm.xlu1 %1189, %v59_v31  }
  0x9a   :  { %v64_v24 = vpop.permute.xlu0 %63 }
  0x9b   :  { %v107_v25 = vmul.f32 %v1438_v22, %v64_v24  ;;  %v655_v24 = vld [vmem:[#allocation5 + $0x20] sm:$0xff] }
  0x9d   :  { %v122_v26 = vadd.f32 %v1443_v23, %v107_v25  ;;  %v654_v25 = vld [vmem:[#allocation5 + $0x18] sm:$0xff] }
  0x9e   :  { %v69_v32 = vpop.permute.xlu0 %68 }
  0x9f   :  { %1190 = vtanh.f32 %v122_v26  ;;  %v108_v33 = vmul.f32 %v1438_v22, %v69_v32  ;;  %v653_v26 = vld [vmem:[#allocation5 + $0x10] sm:$0xff] }
  0xa1   :  { %v123_v34 = vadd.f32 %v1443_v23, %v108_v33 }
  0xa2   :  { %v84_v53 = vpop.permute.xlu0 %83 }
  0xa3   :  { %v111_v54 = vmul.f32 %v1438_v22, %v84_v53 }
  0xa5   :  { %v126_v55 = vadd.f32 %v1443_v23, %v111_v54 }
  0xa6   :  { %v94_v11 = vpop.permute.xlu0 %93 }
  0xac   :  { %v1191_v27 = vpop.eup %1190 }
  0xad   :  { %933 = vmatmul.mubr.f32.vlgmr.msra.gmra.mxu0 %v1191_v27  ;;  %v652_v27 = vld [vmem:[#allocation5 + $0x8] sm:$0xff] }
  0xae   :  { %971 = vmatpush3.msra.mxu0 %v1326_v3  ;;  %1002 = vmatprep.mubr.msk.f32.mxu0 %vm1278_vm0, %v1277_v1 }
  0xaf   :  { %972 = vmatprep.subr.mxu0 %v1277_v1 }
  0xb0   :  { %973 = vmatpush3.msra.mxu0 %v1328_v4 }
  0xb1   :  { %974 = vmatprep.subr.mxu0 %v1277_v1 }
  0xb2   :  { %975 = vmatpush3.msra.mxu0 %v1336_v6 }
  0xb3   :  { %976 = vmatprep.subr.mxu0 %v1277_v1 }
  0xb4   :  { %977 = vmatpush3.msra.mxu0 %v1342_v7 }
  0xb5   :  { %978 = vmatprep.subr.mxu0 %v1277_v1 }
  0xb6   :  { %979 = vmatpush3.msra.mxu0 %v1350_v9 }
  0xb7   :  { %980 = vmatprep.subr.mxu0 %v1277_v1 }
  0xb8   :  { %981 = vmatpush3.msra.mxu0 %v1356_v10 }
  0xb9   :  { %982 = vmatprep.subr.mxu0 %v1277_v1 }
  0xba   :  { %983 = vmatpush3.msra.mxu0 %v1365_v12 }
  0xbb   :  { %984 = vmatprep.subr.mxu0 %v1277_v1  ;;  %v74_v39 = vpop.permute.xlu1 %73 }
  0xbc   :  { %985 = vmatpush3.msra.mxu0 %v1371_v13  ;;  %v109_v40 = vmul.f32 %v1438_v22, %v74_v39 }
  0xbd   :  { %986 = vmatprep.subr.mxu0 %v1277_v1 }
  0xbe   :  { %987 = vmatpush3.msra.mxu0 %v1376_v14  ;;  %v124_v41 = vadd.f32 %v1443_v23, %v109_v40 }
  0xbf   :  { %988 = vmatprep.subr.mxu0 %v1277_v1  ;;  %v79_v46 = vpop.permute.xlu1 %78 }
  0xc0   :  { %989 = vmatpush3.msra.mxu0 %v1382_v15  ;;  %v110_v47 = vmul.f32 %v1438_v22, %v79_v46 }
  0xc1   :  { %990 = vmatprep.subr.mxu0 %v1277_v1 }
  0xc2   :  { %991 = vmatpush3.msra.mxu0 %v1388_v16  ;;  %v125_v48 = vadd.f32 %v1443_v23, %v110_v47 }
  0xc3   :  { %992 = vmatprep.subr.mxu0 %v1277_v1  ;;  %v89_v60 = vpop.permute.xlu1 %88 }
  0xc4   :  { %993 = vmatpush3.msra.mxu0 %v1394_v17  ;;  %v112_v61 = vmul.f32 %v1438_v22, %v89_v60 }
  0xc5   :  { %994 = vmatprep.subr.mxu0 %v1277_v1 }
  0xc6   :  { %995 = vmatpush3.msra.mxu0 %v1400_v18  ;;  %v127_v62 = vadd.f32 %v1443_v23, %v112_v61 }
  0xc7   :  { %996 = vmatprep.subr.mxu0 %v1277_v1  ;;  %v99_v29 = vpop.permute.xlu1 %98 }
  0xc8   :  { %997 = vmatpush3.msra.mxu0 %v1406_v19  ;;  %v114_v30 = vmul.f32 %v1438_v22, %v99_v29 }
  0xc9   :  { %998 = vmatprep.subr.mxu0 %v1277_v1 }
  0xca   :  { %999 = vmatpush3.msra.mxu0 %v1412_v20  ;;  %v129_v31 = vadd.f32 %v1443_v23, %v114_v30 }
  0xcb   :  { %1000 = vmatprep.subr.mxu0 %v1277_v1 }
  0xcc   :  { %1001 = vmatpush3.msra.mxu0 %v1418_v21 }
  0xcd   :  { %1040 = vmatprep.subr.mxu0 %v1277_v1 }
 0x16d   :  { %v213_v35 = vpop.f32.mrf.mxu0 }
 0x16e   :  { %v217_v36 = vadd.f32 %v213_v35, %v123_v34 }
 0x16f   :  { %v934_v37 = vpop.f32.mrf.mxu0 }
 0x170   :  { %1192 = vtanh.f32 %v217_v36  ;;  %v763_v36 = vld [vmem:[%s1670_s5] ss:$0 sm:$0xff] }
 0x17d   :  { %v1193_v38 = vpop.eup %1192 }
 0x17e   :  { %968 = vmatmul.mubr.f32.vlgmr.msra.gmra.mxu1 %v1193_v38 }
 0x17f   :  { %1006 = vmatpush3.msra.mxu1 %v1326_v3  ;;  %1037 = vmatprep.mubr.msk.f32.mxu1 %vm1278_vm0, %v1277_v1 }
 0x180   :  { %1007 = vmatprep.subr.mxu1 %v1277_v1 }
 0x181   :  { %1008 = vmatpush3.msra.mxu1 %v1328_v4 }
 0x182   :  { %1009 = vmatprep.subr.mxu1 %v1277_v1 }
 0x183   :  { %1010 = vmatpush3.msra.mxu1 %v1336_v6 }
 0x184   :  { %1011 = vmatprep.subr.mxu1 %v1277_v1 }
 0x185   :  { %1012 = vmatpush3.msra.mxu1 %v1342_v7 }
 0x186   :  { %1013 = vmatprep.subr.mxu1 %v1277_v1 }
 0x187   :  { %1014 = vmatpush3.msra.mxu1 %v1350_v9 }
 0x188   :  { %1015 = vmatprep.subr.mxu1 %v1277_v1 }
 0x189   :  { %1016 = vmatpush3.msra.mxu1 %v1356_v10 }
 0x18a   :  { %1017 = vmatprep.subr.mxu1 %v1277_v1 }
 0x18b   :  { %1018 = vmatpush3.msra.mxu1 %v1365_v12 }
 0x18c   :  { %1019 = vmatprep.subr.mxu1 %v1277_v1 }
 0x18d   :  { %1020 = vmatpush3.msra.mxu1 %v1371_v13 }
 0x18e   :  { %1021 = vmatprep.subr.mxu1 %v1277_v1 }
 0x18f   :  { %1022 = vmatpush3.msra.mxu1 %v1376_v14 }
 0x190   :  { %1023 = vmatprep.subr.mxu1 %v1277_v1 }
 0x191   :  { %1024 = vmatpush3.msra.mxu1 %v1382_v15 }
 0x192   :  { %1025 = vmatprep.subr.mxu1 %v1277_v1 }
 0x193   :  { %1026 = vmatpush3.msra.mxu1 %v1388_v16 }
 0x194   :  { %1027 = vmatprep.subr.mxu1 %v1277_v1 }
 0x195   :  { %1028 = vmatpush3.msra.mxu1 %v1394_v17 }
 0x196   :  { %1029 = vmatprep.subr.mxu1 %v1277_v1 }
 0x197   :  { %1030 = vmatpush3.msra.mxu1 %v1400_v18 }
 0x198   :  { %1031 = vmatprep.subr.mxu1 %v1277_v1 }
 0x199   :  { %1032 = vmatpush3.msra.mxu1 %v1406_v19 }
 0x19a   :  { %1033 = vmatprep.subr.mxu1 %v1277_v1 }
 0x19b   :  { %1034 = vmatpush3.msra.mxu1 %v1412_v20 }
 0x19c   :  { %1035 = vmatprep.subr.mxu1 %v1277_v1 }
 0x19d   :  { %1036 = vmatpush3.msra.mxu1 %v1418_v21 }
 0x19e   :  { %1075 = vmatprep.subr.mxu1 %v1277_v1 }
 0x23e   :  { %v285_v42 = vpop.f32.mrf.mxu1 }
 0x23f   :  { %v289_v43 = vadd.f32 %v285_v42, %v124_v41 }
 0x240   :  { %v969_v44 = vpop.f32.mrf.mxu1 }
 0x241   :  { %1194 = vtanh.f32 %v289_v43 }
 0x24e   :  { %v1195_v45 = vpop.eup %1194 }
 0x24f   :  { %1003 = vmatmul.mubr.f32.vlgmr.msra.gmra.mxu0 %v1195_v45 }
 0x250   :  { %1041 = vmatpush3.msra.mxu0 %v1326_v3  ;;  %1072 = vmatprep.mubr.msk.f32.mxu0 %vm1278_vm0, %v1277_v1 }
 0x251   :  { %1042 = vmatprep.subr.mxu0 %v1277_v1 }
 0x252   :  { %1043 = vmatpush3.msra.mxu0 %v1328_v4 }
 0x253   :  { %1044 = vmatprep.subr.mxu0 %v1277_v1 }
 0x254   :  { %1045 = vmatpush3.msra.mxu0 %v1336_v6 }
 0x255   :  { %1046 = vmatprep.subr.mxu0 %v1277_v1 }
 0x256   :  { %1047 = vmatpush3.msra.mxu0 %v1342_v7 }
 0x257   :  { %1048 = vmatprep.subr.mxu0 %v1277_v1 }
 0x258   :  { %1049 = vmatpush3.msra.mxu0 %v1350_v9 }
 0x259   :  { %1050 = vmatprep.subr.mxu0 %v1277_v1 }
 0x25a   :  { %1051 = vmatpush3.msra.mxu0 %v1356_v10 }
 0x25b   :  { %1052 = vmatprep.subr.mxu0 %v1277_v1 }
 0x25c   :  { %1053 = vmatpush3.msra.mxu0 %v1365_v12 }
 0x25d   :  { %1054 = vmatprep.subr.mxu0 %v1277_v1 }
 0x25e   :  { %1055 = vmatpush3.msra.mxu0 %v1371_v13 }
 0x25f   :  { %1056 = vmatprep.subr.mxu0 %v1277_v1 }
 0x260   :  { %1057 = vmatpush3.msra.mxu0 %v1376_v14 }
 0x261   :  { %1058 = vmatprep.subr.mxu0 %v1277_v1 }
 0x262   :  { %1059 = vmatpush3.msra.mxu0 %v1382_v15 }
 0x263   :  { %1060 = vmatprep.subr.mxu0 %v1277_v1 }
 0x264   :  { %1061 = vmatpush3.msra.mxu0 %v1388_v16 }
 0x265   :  { %1062 = vmatprep.subr.mxu0 %v1277_v1 }
 0x266   :  { %1063 = vmatpush3.msra.mxu0 %v1394_v17 }
 0x267   :  { %1064 = vmatprep.subr.mxu0 %v1277_v1 }
 0x268   :  { %1065 = vmatpush3.msra.mxu0 %v1400_v18 }
 0x269   :  { %1066 = vmatprep.subr.mxu0 %v1277_v1 }
 0x26a   :  { %1067 = vmatpush3.msra.mxu0 %v1406_v19 }
 0x26b   :  { %1068 = vmatprep.subr.mxu0 %v1277_v1 }
 0x26c   :  { %1069 = vmatpush3.msra.mxu0 %v1412_v20 }
 0x26d   :  { %1070 = vmatprep.subr.mxu0 %v1277_v1 }
 0x26e   :  { %1071 = vmatpush3.msra.mxu0 %v1418_v21 }
 0x26f   :  { %1110 = vmatprep.subr.mxu0 %v1277_v1 }
 0x30f   :  { %v357_v49 = vpop.f32.mrf.mxu0 }
 0x310   :  { %v361_v50 = vadd.f32 %v357_v49, %v125_v48 }
 0x311   :  { %v1004_v51 = vpop.f32.mrf.mxu0 }
 0x312   :  { %1196 = vtanh.f32 %v361_v50 }
 0x31f   :  { %v1197_v52 = vpop.eup %1196 }
 0x320   :  { %1038 = vmatmul.mubr.f32.vlgmr.msra.gmra.mxu1 %v1197_v52 }
 0x321   :  { %1076 = vmatpush3.msra.mxu1 %v1326_v3  ;;  %1107 = vmatprep.mubr.msk.f32.mxu1 %vm1278_vm0, %v1277_v1 }
 0x322   :  { %1077 = vmatprep.subr.mxu1 %v1277_v1 }
 0x323   :  { %1078 = vmatpush3.msra.mxu1 %v1328_v4 }
 0x324   :  { %1079 = vmatprep.subr.mxu1 %v1277_v1 }
 0x325   :  { %1080 = vmatpush3.msra.mxu1 %v1336_v6 }
 0x326   :  { %1081 = vmatprep.subr.mxu1 %v1277_v1 }
 0x327   :  { %1082 = vmatpush3.msra.mxu1 %v1342_v7 }
 0x328   :  { %1083 = vmatprep.subr.mxu1 %v1277_v1 }
 0x329   :  { %1084 = vmatpush3.msra.mxu1 %v1350_v9 }
 0x32a   :  { %1085 = vmatprep.subr.mxu1 %v1277_v1 }
 0x32b   :  { %1086 = vmatpush3.msra.mxu1 %v1356_v10 }
 0x32c   :  { %1087 = vmatprep.subr.mxu1 %v1277_v1 }
 0x32d   :  { %1088 = vmatpush3.msra.mxu1 %v1365_v12 }
 0x32e   :  { %1089 = vmatprep.subr.mxu1 %v1277_v1 }
 0x32f   :  { %1090 = vmatpush3.msra.mxu1 %v1371_v13 }
 0x330   :  { %1091 = vmatprep.subr.mxu1 %v1277_v1 }
 0x331   :  { %1092 = vmatpush3.msra.mxu1 %v1376_v14 }
 0x332   :  { %1093 = vmatprep.subr.mxu1 %v1277_v1 }
 0x333   :  { %1094 = vmatpush3.msra.mxu1 %v1382_v15 }
 0x334   :  { %1095 = vmatprep.subr.mxu1 %v1277_v1 }
 0x335   :  { %1096 = vmatpush3.msra.mxu1 %v1388_v16 }
 0x336   :  { %1097 = vmatprep.subr.mxu1 %v1277_v1 }
 0x337   :  { %1098 = vmatpush3.msra.mxu1 %v1394_v17 }
 0x338   :  { %1099 = vmatprep.subr.mxu1 %v1277_v1 }
 0x339   :  { %1100 = vmatpush3.msra.mxu1 %v1400_v18 }
 0x33a   :  { %1101 = vmatprep.subr.mxu1 %v1277_v1 }
 0x33b   :  { %1102 = vmatpush3.msra.mxu1 %v1406_v19 }
 0x33c   :  { %1103 = vmatprep.subr.mxu1 %v1277_v1 }
 0x33d   :  { %1104 = vmatpush3.msra.mxu1 %v1412_v20 }
 0x33e   :  { %1105 = vmatprep.subr.mxu1 %v1277_v1 }
 0x33f   :  { %1106 = vmatpush3.msra.mxu1 %v1418_v21 }
 0x340   :  { %1145 = vmatprep.subr.mxu1 %v1277_v1 }
 0x3e0   :  { %v429_v56 = vpop.f32.mrf.mxu1 }
 0x3e1   :  { %v433_v57 = vadd.f32 %v429_v56, %v126_v55 }
 0x3e2   :  { %v1039_v58 = vpop.f32.mrf.mxu1 }
 0x3e3   :  { %1198 = vtanh.f32 %v433_v57 }
 0x3f0   :  { %v1199_v59 = vpop.eup %1198 }
 0x3f1   :  { %1073 = vmatmul.mubr.f32.vlgmr.msra.gmra.mxu0 %v1199_v59 }
 0x3f2   :  { %1111 = vmatpush3.msra.mxu0 %v1326_v3  ;;  %1142 = vmatprep.mubr.msk.f32.mxu0 %vm1278_vm0, %v1277_v1 }
 0x3f3   :  { %1112 = vmatprep.subr.mxu0 %v1277_v1 }
 0x3f4   :  { %1113 = vmatpush3.msra.mxu0 %v1328_v4  ;;  %v666_v4 = vld [vmem:[#allocation5 + $0x78] sm:$0xff] }
 0x3f5   :  { %1114 = vmatprep.subr.mxu0 %v1277_v1 }
 0x3f6   :  { %1115 = vmatpush3.msra.mxu0 %v1336_v6  ;;  %v664_v6 = vld [vmem:[#allocation5 + $0x68] sm:$0xff] }
 0x3f7   :  { %1116 = vmatprep.subr.mxu0 %v1277_v1 }
 0x3f8   :  { %1117 = vmatpush3.msra.mxu0 %v1342_v7  ;;  %v663_v7 = vld [vmem:[#allocation5 + $0x60] sm:$0xff] }
 0x3f9   :  { %1118 = vmatprep.subr.mxu0 %v1277_v1 }
 0x3fa   :  { %1119 = vmatpush3.msra.mxu0 %v1350_v9  ;;  %v661_v9 = vld [vmem:[#allocation5 + $0x50] sm:$0xff] }
 0x3fb   :  { %1120 = vmatprep.subr.mxu0 %v1277_v1 }
 0x3fc   :  { %1121 = vmatpush3.msra.mxu0 %v1356_v10  ;;  %v660_v10 = vld [vmem:[#allocation5 + $0x48] sm:$0xff] }
 0x3fd   :  { %1122 = vmatprep.subr.mxu0 %v1277_v1 }
 0x3fe   :  { %1123 = vmatpush3.msra.mxu0 %v1365_v12  ;;  %v113_v12 = vmul.f32 %v1438_v22, %v94_v11 }
 0x3ff   :  { %1124 = vmatprep.subr.mxu0 %v1277_v1 }
 0x400   :  { %1125 = vmatpush3.msra.mxu0 %v1371_v13  ;;  %v128_v13 = vadd.f32 %v1443_v23, %v113_v12 }
 0x401   :  { %1126 = vmatprep.subr.mxu0 %v1277_v1 }
 0x402   :  { %1127 = vmatpush3.msra.mxu0 %v1376_v14 }
 0x403   :  { %1128 = vmatprep.subr.mxu0 %v1277_v1 }
 0x404   :  { %1129 = vmatpush3.msra.mxu0 %v1382_v15 }
 0x405   :  { %1130 = vmatprep.subr.mxu0 %v1277_v1 }
 0x406   :  { %1131 = vmatpush3.msra.mxu0 %v1388_v16 }
 0x407   :  { %1132 = vmatprep.subr.mxu0 %v1277_v1 }
 0x408   :  { %1133 = vmatpush3.msra.mxu0 %v1394_v17 }
 0x409   :  { %1134 = vmatprep.subr.mxu0 %v1277_v1 }
 0x40a   :  { %1135 = vmatpush3.msra.mxu0 %v1400_v18  ;;  %v659_v18 = vld [vmem:[#allocation5 + $0x40] sm:$0xff] }
 0x40b   :  { %1136 = vmatprep.subr.mxu0 %v1277_v1 }
 0x40c   :  { %1137 = vmatpush3.msra.mxu0 %v1406_v19  ;;  %v658_v19 = vld [vmem:[#allocation5 + $0x38] sm:$0xff] }
 0x40d   :  { %1138 = vmatprep.subr.mxu0 %v1277_v1 }
 0x40e   :  { %1139 = vmatpush3.msra.mxu0 %v1412_v20  ;;  %v657_v20 = vld [vmem:[#allocation5 + $0x30] sm:$0xff] }
 0x40f   :  { %1140 = vmatprep.subr.mxu0 %v1277_v1 }
 0x410   :  { %1141 = vmatpush3.msra.mxu0 %v1418_v21  ;;  %v656_v21 = vld [vmem:[#allocation5 + $0x28] sm:$0xff] }
 0x4b1   :  { %v501_v63 = vpop.f32.mrf.mxu0 }
 0x4b2   :  { %v505_v0 = vadd.f32 %v501_v63, %v127_v62 }
 0x4b3   :  { %v1074_v2 = vpop.f32.mrf.mxu0 }
 0x4b4   :  { %1200 = vtanh.f32 %v505_v0 }
 0x4c1   :  { %v1201_v3 = vpop.eup %1200 }
 0x4c2   :  { %1108 = vmatmul.mubr.f32.vlgmr.msra.gmra.mxu1 %v1201_v3 }
 0x4c3   :  { %1177 = vmatprep.mubr.msk.f32.mxu1 %vm1278_vm0, %v1277_v1  ;;  %1146 = vmatpush3.msra.mxu1 %v666_v4 }
 0x4c4   :  { %1147 = vmatprep.subr.mxu1 %v1277_v1 }
 0x4c5   :  { %1148 = vmatpush3.msra.mxu1 %v665_v5 }
 0x4c6   :  { %1149 = vmatprep.subr.mxu1 %v1277_v1 }
 0x4c7   :  { %1150 = vmatpush3.msra.mxu1 %v664_v6 }
 0x4c8   :  { %1151 = vmatprep.subr.mxu1 %v1277_v1 }
 0x4c9   :  { %1152 = vmatpush3.msra.mxu1 %v663_v7 }
 0x4ca   :  { %1153 = vmatprep.subr.mxu1 %v1277_v1 }
 0x4cb   :  { %1154 = vmatpush3.msra.mxu1 %v662_v8 }
 0x4cc   :  { %1155 = vmatprep.subr.mxu1 %v1277_v1 }
 0x4cd   :  { %1156 = vmatpush3.msra.mxu1 %v661_v9 }
 0x4ce   :  { %1157 = vmatprep.subr.mxu1 %v1277_v1 }
 0x4cf   :  { %1158 = vmatpush3.msra.mxu1 %v660_v10 }
 0x4d0   :  { %1159 = vmatprep.subr.mxu1 %v1277_v1 }
 0x4d1   :  { %1160 = vmatpush3.msra.mxu1 %v659_v18 }
 0x4d2   :  { %1161 = vmatprep.subr.mxu1 %v1277_v1 }
 0x4d3   :  { %1162 = vmatpush3.msra.mxu1 %v658_v19 }
 0x4d4   :  { %1163 = vmatprep.subr.mxu1 %v1277_v1 }
 0x4d5   :  { %1164 = vmatpush3.msra.mxu1 %v657_v20 }
 0x4d6   :  { %1165 = vmatprep.subr.mxu1 %v1277_v1 }
 0x4d7   :  { %1166 = vmatpush3.msra.mxu1 %v656_v21 }
 0x4d8   :  { %1167 = vmatprep.subr.mxu1 %v1277_v1 }
 0x4d9   :  { %1168 = vmatpush3.msra.mxu1 %v655_v24 }
 0x4da   :  { %1169 = vmatprep.subr.mxu1 %v1277_v1 }
 0x4db   :  { %1170 = vmatpush3.msra.mxu1 %v654_v25 }
 0x4dc   :  { %1171 = vmatprep.subr.mxu1 %v1277_v1 }
 0x4dd   :  { %1172 = vmatpush3.msra.mxu1 %v653_v26 }
 0x4de   :  { %1173 = vmatprep.subr.mxu1 %v1277_v1 }
 0x4df   :  { %1174 = vmatpush3.msra.mxu1 %v652_v27 }
 0x4e0   :  { %1175 = vmatprep.subr.mxu1 %v1277_v1 }
 0x4e1   :  { %1176 = vmatpush3.msra.mxu1 %v651_v28 }
 0x582   :  { %v573_v14 = vpop.f32.mrf.mxu1 }
 0x583   :  { %v577_v15 = vadd.f32 %v573_v14, %v128_v13 }
 0x584   :  { %v1109_v16 = vpop.f32.mrf.mxu1 }
 0x585   :  { %1202 = vtanh.f32 %v577_v15 }
 0x592   :  { %v1203_v17 = vpop.eup %1202 }
 0x593   :  { %1143 = vmatmul.mubr.f32.vlgmr.msra.gmra.mxu0 %v1203_v17 }
 0x653   :  { %v645_v32 = vpop.f32.mrf.mxu0 }
 0x654   :  { %v649_v33 = vadd.f32 %v645_v32, %v129_v31 }
 0x655   :  { %v1144_v34 = vpop.f32.mrf.mxu0 }
 0x656   :  { %1204 = vtanh.f32 %v649_v33 }
 0x663   :  { %v1205_v35 = vpop.eup %1204 }
 0x664   :  { %1178 = vmatmul.mubr.f32.vlgmr.msra.gmra.mxu1 %v1205_v35 }
 0x724   :  { %v740_v37 = vpop.f32.mrf.mxu1 }
 0x725   :  { %v741_v1 = vadd.f32 %v763_v36, %v740_v37 }
 0x726   :  { %v1179_v38 = vpop.f32.mrf.mxu1 }
 0x727   :  { %744 = vst [vmem:[#allocation7] sm:$0xff] %v741_v1 }
 0x728   :  { %1257 = shalt.err (!%p1254_p0)
}
 0x729   :  { %754 = dma.vmem_to_hbm [thread:$0]  %s752_s27, 128, %s1671_s6, [#allocation4]  }
 0x72a   :  { %1270 = dma.done.wait [#allocation4], 128  }
 0x72b   :  { %1271 = vsyncadd [#allocation4], 4294967168 }
 0x72c   :  { %758 = vsyncpa [#allocation3], 1 }
 0x72d   :  { %759 = vsyncpa [#allocation6], 1 }
 0x72e   :  { %760 = vsyncpa [#allocation4], 1 }

</bundles_post_ra>
